<compile_context>
chip_gen: v7x
topology: tpu7x:2x2x1
jax: 0.10.0
libtpu: 0.0.40
codegen_flags: <defaults>
</compile_context>

<pallas_src>
import jax
import jax.numpy as jnp
from jax.experimental import pallas as pl
from jax.experimental.pallas import tpu as pltpu

# ----- module hyperparameters (nodes_l2 / nodes_l3 from the original script) -----
NODES_L2 = 64   # encoder3 input / decoder3 output width
NODES_L3 = 32   # bottleneck width

PACK = 2                       # batch rows packed per lane-group -> 128-lane I/O
LANES_IN = PACK * NODES_L2     # 128  (kernel input / output lane width)
LANES_HID = PACK * NODES_L3    # 64   (hidden lane width)
TB_ROWS = 2048                 # packed rows per grid step (= 4096 batch rows)
MIN_SPLIT_ROWS = 256           # min packed rows before splitting a single tile in 2


def _ae3_kernel(x_ref, w1_ref, b1_ref, w2_ref, b2_ref, out_ref):
    """Fused forward on packed tiles: relu(relu(x @ W1 + b1) @ W2 + b2)."""
    x = x_ref[...].astype(jnp.float32)                        # (tb, 128)
    # encoder3 (block-diag packed): Linear + ReLU
    h = jnp.dot(x, w1_ref[...], preferred_element_type=jnp.float32)
    h = jnp.maximum(h + b1_ref[...], 0.0)                     # (tb, 64)
    # decoder3 (block-diag packed): Linear + ReLU
    y = jnp.dot(h, w2_ref[...], preferred_element_type=jnp.float32)
    y = jnp.maximum(y + b2_ref[...], 0.0)                     # (tb, 128)
    out_ref[...] = y.astype(out_ref.dtype)                    # final dtype from kernel


def pack_params(params):
    """One-time glue: PyTorch (out,in) weights -> PACK-way block-diagonal (in,out)."""
    eye = jnp.eye(PACK, dtype=jnp.float32)
    w1 = jnp.kron(eye, params["enc_w"].T.astype(jnp.float32))            # (128, 64)
    b1 = jnp.tile(params["enc_b"].astype(jnp.float32), PACK)[None, :]    # (1, 64)
    w2 = jnp.kron(eye, params["dec_w"].T.astype(jnp.float32))            # (64, 128)
    b2 = jnp.tile(params["dec_b"].astype(jnp.float32), PACK)[None, :]    # (1, 128)
    return (w1, b1, w2, b2)


def _choose_tile(R, tb_max, sub_mult):
    """Pick (tb, Rp): tile rows and padded packed-row count."""
    if R <= tb_max:
        # Mid-sized batch that fits one tile: split in 2 so both v7x TCs run.
        if R >= 2 * MIN_SPLIT_ROWS and R % (2 * sub_mult) == 0:
            return R // 2, R
        return R, R            # single tile == full array (rule-safe, any size)
    tb = max(sub_mult, (tb_max // sub_mult) * sub_mult)
    Rp = pl.cdiv(R, tb) * tb   # >= 2 grid steps automatically here
    return tb, Rp


def autoencoder3_forward(x, packed_params, *, tb_rows=TB_ROWS):
    """x: (B, NODES_L2) in any float dtype. packed_params: from pack_params()."""
    w1, b1, w2, b2 = packed_params
    B = x.shape[0]
    dtype = x.dtype
    itemsize = jnp.dtype(dtype).itemsize
    sub_mult = max(8, 32 // itemsize)          # 8 for f32, 16 for bf16, 32 for int8

    # ---- packed-row count and batch tiling (single fused pad pass) ----
    R = pl.cdiv(B, PACK)
    tb, Rp = _choose_tile(R, tb_rows, sub_mult)
    total_rows = Rp * PACK
    if total_rows != B:
        x = jnp.pad(x, ((0, total_rows - B), (0, 0)))
    xr = x.reshape(Rp, LANES_IN)               # metadata-only reshape, caller dtype
    grid = (Rp // tb,)

    # ---- VMEM limit: only raise above defaults for very large caller tiles ----
    tile_bytes = tb * LANES_IN * itemsize
    vmem_need = 4 * tile_bytes + (2 << 20)     # dbl-buffered in+out + weights/slack
    vmem_limit = int(vmem_need * 3 // 2) if vmem_need > (12 << 20) else None

    const = lambda shape: pl.BlockSpec(shape, lambda i: (0,) * len(shape))

    out = pl.pallas_call(
        _ae3_kernel,
        out_shape=jax.ShapeDtypeStruct((Rp, LANES_IN), dtype),
        grid=grid,
        in_specs=[
            pl.BlockSpec((tb, LANES_IN), lambda i: (i, 0)),   # x tile: streams over batch
            const((LANES_IN, LANES_HID)),                     # W1_bd: VMEM-resident
            const((1, LANES_HID)),                            # b1_bd
            const((LANES_HID, LANES_IN)),                     # W2_bd
            const((1, LANES_IN)),                             # b2_bd
        ],
        out_specs=pl.BlockSpec((tb, LANES_IN), lambda i: (i, 0)),
        compiler_params=pltpu.CompilerParams(
            dimension_semantics=("parallel",),                # shard grid across TCs
            vmem_limit_bytes=vmem_limit),
    )(xr, w1, b1, w2, b2)

    # unpack lanes back to (batch, NODES_L2) and drop padding rows (already caller dtype)
    return out.reshape(Rp * PACK, NODES_L2)[:B]


def init_params(key):
    """Deterministic synthetic params with PyTorch nn.Linear shapes."""
    k1, k2, k3, k4 = jax.random.split(key, 4)
    s1 = 1.0 / jnp.sqrt(NODES_L2)
    s2 = 1.0 / jnp.sqrt(NODES_L3)
    return {
        "enc_w": jax.random.uniform(k1, (NODES_L3, NODES_L2), jnp.float32, -s1, s1),
        "enc_b": jax.random.uniform(k2, (NODES_L3,), jnp.float32, -s1, s1),
        "dec_w": jax.random.uniform(k3, (NODES_L2, NODES_L3), jnp.float32, -s2, s2),
        "dec_b": jax.random.uniform(k4, (NODES_L2,), jnp.float32, -s2, s2),
    }


def _reference(x, p):
    h = jnp.maximum(x.astype(jnp.float32) @ p["enc_w"].T + p["enc_b"], 0.0)
    return jnp.maximum(h @ p["dec_w"].T + p["dec_b"], 0.0)


if __name__ == "__main__":
    key = jax.random.PRNGKey(0)
    kx, kx2, kx3, kp = jax.random.split(key, 4)
    params = init_params(kp)
    packed = pack_params(params)   # hoisted: built once per parameter set

    # 1) small single-tile path (B even, fits one grid step, block == full array)
    B = 8
    x = jax.random.normal(kx, (B, NODES_L2), dtype=jnp.float32)
    out = jax.block_until_ready(autoencoder3_forward(x, packed))
    ref = _reference(x, params)
    assert out.shape == (B, NODES_L2), out.shape
    assert out.dtype == x.dtype, out.dtype
    assert jnp.allclose(out, ref, atol=1e-5, rtol=1e-5), "mismatch (single tile)"

    # 2) multi-tile path with odd batch (exercises fused PACK+tile padding), tiny tile
    B2 = 41
    x2 = jax.random.normal(kx2, (B2, NODES_L2), dtype=jnp.float32)
    out2 = jax.block_until_ready(autoencoder3_forward(x2, packed, tb_rows=8))
    ref2 = _reference(x2, params)
    assert out2.shape == (B2, NODES_L2), out2.shape
    assert jnp.allclose(out2, ref2, atol=1e-5, rtol=1e-5), "mismatch (multi tile)"

    # 3) mid-sized batch hitting the 2-way megacore split, bf16 I/O end-to-end
    B3 = 1024                                      # R = 512 -> tb = 256, grid = (2,)
    x3 = jax.random.normal(kx3, (B3, NODES_L2), dtype=jnp.bfloat16)
    out3 = jax.block_until_ready(autoencoder3_forward(x3, packed))
    ref3 = _reference(x3, params).astype(jnp.bfloat16)
    assert out3.shape == (B3, NODES_L2), out3.shape
    assert out3.dtype == jnp.bfloat16, out3.dtype
    assert jnp.allclose(out3.astype(jnp.float32), ref3.astype(jnp.float32),
                        atol=2e-2, rtol=2e-2), "mismatch (bf16 split path)"

    print("KERNEL_OK")
</pallas_src>

<mosaic_0001>
module attributes {stable_mosaic.version = 11 : i64} {
  func.func @_ae3_kernel(%arg0: i32, %arg1: memref<4x128xf32, #tpu.memory_space<vmem>>, %arg2: memref<128x64xf32, #tpu.memory_space<vmem>>, %arg3: memref<1x64xf32, #tpu.memory_space<vmem>>, %arg4: memref<64x128xf32, #tpu.memory_space<vmem>>, %arg5: memref<1x128xf32, #tpu.memory_space<vmem>>, %arg6: memref<4x128xf32, #tpu.memory_space<vmem>>) attributes {dimension_semantics = [#tpu.dimension_semantics<parallel>], iteration_bounds = array<i64: 1>, scalar_prefetch = 0 : i64, scratch_operands = 0 : i64, tpu.core_type = #tpu.core_type<tc>, window_params = [{transform_indices = @transform_0, window_bounds = array<i64: 4, 128>}, {pipeline_mode = #tpu.pipeline_mode<synchronous>, transform_indices = @transform_1, window_bounds = array<i64: 128, 64>}, {pipeline_mode = #tpu.pipeline_mode<synchronous>, transform_indices = @transform_2, window_bounds = array<i64: 1, 64>}, {pipeline_mode = #tpu.pipeline_mode<synchronous>, transform_indices = @transform_3, window_bounds = array<i64: 64, 128>}, {pipeline_mode = #tpu.pipeline_mode<synchronous>, transform_indices = @transform_4, window_bounds = array<i64: 1, 128>}, {transform_indices = @transform_5, window_bounds = array<i64: 4, 128>}]} {
    %c0 = arith.constant 0 : index
    %c0_0 = arith.constant 0 : index
    %0 = vector.load %arg1[%c0, %c0_0] : memref<4x128xf32, #tpu.memory_space<vmem>>, vector<4x128xf32>
    %c0_1 = arith.constant 0 : index
    %c0_2 = arith.constant 0 : index
    %1 = vector.load %arg2[%c0_1, %c0_2] : memref<128x64xf32, #tpu.memory_space<vmem>>, vector<128x64xf32>
    %cst = arith.constant dense<0.000000e+00> : vector<4x64xf32>
    %2 = tpu.matmul %0, %1, %cst {dimension_numbers = #tpu.dot_dimension_numbers<[1], [0], [0], [1], [0, 0, 1, 1], [], []>} : vector<4x128xf32>, vector<128x64xf32>, vector<4x64xf32> -> vector<4x64xf32>
    %c0_3 = arith.constant 0 : index
    %c0_4 = arith.constant 0 : index
    %3 = vector.load %arg3[%c0_3, %c0_4] : memref<1x64xf32, #tpu.memory_space<vmem>>, vector<1x64xf32>
    %4 = vector.broadcast %3 : vector<1x64xf32> to vector<4x64xf32>
    %5 = arith.addf %2, %4 : vector<4x64xf32>
    %cst_5 = arith.constant 0.000000e+00 : f32
    %6 = vector.broadcast %cst_5 : f32 to vector<4x64xf32>
    %7 = arith.maximumf %5, %6 : vector<4x64xf32>
    %c0_6 = arith.constant 0 : index
    %c0_7 = arith.constant 0 : index
    %8 = vector.load %arg4[%c0_6, %c0_7] : memref<64x128xf32, #tpu.memory_space<vmem>>, vector<64x128xf32>
    %cst_8 = arith.constant dense<0.000000e+00> : vector<4x128xf32>
    %9 = tpu.matmul %7, %8, %cst_8 {dimension_numbers = #tpu.dot_dimension_numbers<[1], [0], [0], [1], [0, 0, 1, 1], [], []>} : vector<4x64xf32>, vector<64x128xf32>, vector<4x128xf32> -> vector<4x128xf32>
    %c0_9 = arith.constant 0 : index
    %c0_10 = arith.constant 0 : index
    %10 = vector.load %arg5[%c0_9, %c0_10] : memref<1x128xf32, #tpu.memory_space<vmem>>, vector<1x128xf32>
    %11 = vector.broadcast %10 : vector<1x128xf32> to vector<4x128xf32>
    %12 = arith.addf %9, %11 : vector<4x128xf32>
    %cst_11 = arith.constant 0.000000e+00 : f32
    %13 = vector.broadcast %cst_11 : f32 to vector<4x128xf32>
    %14 = arith.maximumf %12, %13 : vector<4x128xf32>
    %c0_12 = arith.constant 0 : index
    %c0_13 = arith.constant 0 : index
    %15 = vector.load %arg6[%c0_12, %c0_13] : memref<4x128xf32, #tpu.memory_space<vmem>>, vector<4x128xf32>
    tpu.vector_store %arg6[%c0_12, %c0_13], %14 {strides = array<i32>} : memref<4x128xf32, #tpu.memory_space<vmem>>, vector<4x128xf32>,
    return
  }
  func.func @transform_0(%arg0: i32) -> (i32, i32) {
    %c0_i32 = arith.constant 0 : i32
    %c0_i32_0 = arith.constant 0 : i32
    return %arg0, %c0_i32 : i32, i32
  }
  func.func @transform_1(%arg0: i32) -> (i32, i32) {
    %c0_i32 = arith.constant 0 : i32
    %c0_i32_0 = arith.constant 0 : i32
    %c0_i32_1 = arith.constant 0 : i32
    return %c0_i32, %c0_i32_0 : i32, i32
  }
  func.func @transform_2(%arg0: i32) -> (i32, i32) {
    %c0_i32 = arith.constant 0 : i32
    %c0_i32_0 = arith.constant 0 : i32
    %c0_i32_1 = arith.constant 0 : i32
    return %c0_i32, %c0_i32_0 : i32, i32
  }
  func.func @transform_3(%arg0: i32) -> (i32, i32) {
    %c0_i32 = arith.constant 0 : i32
    %c0_i32_0 = arith.constant 0 : i32
    %c0_i32_1 = arith.constant 0 : i32
    return %c0_i32, %c0_i32_0 : i32, i32
  }
  func.func @transform_4(%arg0: i32) -> (i32, i32) {
    %c0_i32 = arith.constant 0 : i32
    %c0_i32_0 = arith.constant 0 : i32
    %c0_i32_1 = arith.constant 0 : i32
    return %c0_i32, %c0_i32_0 : i32, i32
  }
  func.func @transform_5(%arg0: i32) -> (i32, i32) {
    %c0_i32 = arith.constant 0 : i32
    %c0_i32_0 = arith.constant 0 : i32
    return %arg0, %c0_i32 : i32, i32
  }
}

</mosaic_0001>

<bundles_post_ra>
// kernel: tpu_custom_call.1
= control target key start
LH: loop header
LB: loop body
LE: loop exit
PB: predicated region body
PF: predicated region fallthrough
CT: control target
= control target key end

     0   :  { %v368_v3 = vmov 0.0|0.0   ;;  %vm369_vm0 = vmmov 0   ;;  %v370_v6 = vmov 0.0   ;;  %s495_s0 = inlined_call_operand.vmem [shape: f32[4,128], index: 0, kind: input, shape index: {}]   ;;  %s496_s1 = inlined_call_operand.vmem [shape: f32[128,64], index: 1, kind: input, shape index: {}]   ;;  %s497_s2 = inlined_call_operand.vmem [shape: f32[1,64], index: 2, kind: input, shape index: {}]   ;;  %s498_s3 = inlined_call_operand.vmem [shape: f32[64,128], index: 3, kind: input, shape index: {}]   ;;  %s499_s4 = inlined_call_operand.vmem [shape: f32[1,128], index: 4, kind: input, shape index: {}]   ;;  %s500_s5 = inlined_call_operand.hbm [shape: f32[4,128], index: 5, kind: output, shape index: {}]  }
   0x1   :  { %v22_v0 = vld [vmem:[%s496_s1] sm:$0xff]  ;;  %v23_v1 = vld [vmem:[%s496_s1 + $0x8] sm:$0xff]  ;;  %v24_v2 = vld [vmem:[%s496_s1 + $0x10] sm:$0xff]  ;;  %304 = vmatprep.subr.bf16.mxu0 %v368_v3  ;;  %282 = vmatprep.mubr.msk.f32.mxu0 %vm369_vm0, %v370_v6 }
   0x2   :  { %v305_v4 = vpack.c.bf16 %v23_v1, %v22_v0  ;;  %v25_v5 = vld [vmem:[%s496_s1 + $0x18] sm:$0xff]  ;;  %328 = vmatprep.subr.bf16.mxu1 %v368_v3  ;;  %301 = vmatprep.mubr.msk.f32.mxu1 %vm369_vm0, %v370_v6  ;;  %v26_v8 = vld [vmem:[%s496_s1 + $0x20] sm:$0xff]  ;;  %v27_v9 = vld [vmem:[%s496_s1 + $0x28] sm:$0xff] }
   0x3   :  { %v308_v7 = vpack.c.bf16 %v25_v5, %v24_v2  ;;  %v116_v10 = vld [vmem:[%s498_s3] sm:$0xff]  ;;  %v117_v11 = vld [vmem:[%s498_s3 + $0x8] sm:$0xff]  ;;  %v118_v12 = vld [vmem:[%s498_s3 + $0x10] sm:$0xff]  ;;  %v311_v14 = vpack.c.bf16 %v27_v9, %v26_v8 }
   0x4   :  { %306 = vmatpush3.bf16.msra.mxu0 %v305_v4  ;;  %v119_v13 = vld [vmem:[%s498_s3 + $0x18] sm:$0xff]  ;;  %v329_v15 = vpack.c.bf16 %v117_v11, %v116_v10  ;;  %v28_v16 = vld [vmem:[%s496_s1 + $0x30] sm:$0xff] }
   0x5   :  { %307 = vmatprep.subr.bf16.mxu0 %v368_v3  ;;  %v29_v17 = vld [vmem:[%s496_s1 + $0x38] sm:$0xff] }
   0x8   :  { %309 = vmatpush3.bf16.msra.mxu0 %v308_v7 }
   0x9   :  { %310 = vmatprep.subr.bf16.mxu0 %v368_v3 }
   0xa   :  { %10 = vsyncpa [#allocation3], 0  ;;  %330 = vmatpush3.bf16.msra.mxu1 %v329_v15  ;;  %v332_v18 = vpack.c.bf16 %v119_v13, %v118_v12  ;;  %v120_v19 = vld [vmem:[%s498_s3 + $0x20] sm:$0xff]  ;;  %v121_v20 = vld [vmem:[%s498_s3 + $0x28] sm:$0xff]  ;;  %v314_v21 = vpack.c.bf16 %v29_v17, %v28_v16  ;;  %vm131_vm1 = vcmask 523264   ;;  %s371_s20 = smov [#allocation2]  }
   0xb   :  { %331 = vmatprep.subr.bf16.mxu1 %v368_v3  ;;  %v30_v22 = vld [vmem:[%s496_s1 + $0x40] sm:$0xff]  ;;  %v31_v23 = vld [vmem:[%s496_s1 + $0x48] sm:$0xff]  ;;  %v335_v24 = vpack.c.bf16 %v121_v20, %v120_v19  ;;  %v32_v26 = vld [vmem:[%s496_s1 + $0x50] sm:$0xff]  ;;  %s213_s21 = sshll.u32 %s371_s20, 4  ;;  %s214_s21 = int_to_ptr.vmem [resolvable:$true] %s213_s21 }
   0xc   :  { %312 = vmatpush3.bf16.msra.mxu0 %v311_v14  ;;  %v317_v25 = vpack.c.bf16 %v31_v23, %v30_v22  ;;  %v33_v27 = vld [vmem:[%s496_s1 + $0x58] sm:$0xff]  ;;  %v34_v29 = vld [vmem:[%s496_s1 + $0x60] sm:$0xff]  ;;  %v35_v30 = vld [vmem:[%s496_s1 + $0x68] sm:$0xff]  ;;  %p349_p1 = scmp.lt.s32.totalorder %s214_s21, %s214_s21 }
   0xd   :  { %313 = vmatprep.subr.bf16.mxu0 %v368_v3  ;;  %v320_v28 = vpack.c.bf16 %v33_v27, %v32_v26  ;;  %v323_v31 = vpack.c.bf16 %v35_v30, %v34_v29  ;;  %v36_v32 = vld [vmem:[%s496_s1 + $0x70] sm:$0xff]  ;;  %v37_v33 = vld [vmem:[%s496_s1 + $0x78] sm:$0xff]  ;;  %v21_v35 = vld [vmem:[%s495_s0] sm:$0xf] }
   0xe   :  { %333 = vmatpush3.bf16.msra.mxu1 %v332_v18  ;;  %v326_v34 = vpack.c.bf16 %v37_v33, %v36_v32  ;;  %v122_v36 = vld [vmem:[%s498_s3 + $0x30] sm:$0xff]  ;;  %v123_v37 = vld [vmem:[%s498_s3 + $0x38] sm:$0xff]  ;;  %v221_v39 = vld [vmem:[%s497_s2] ss:$0 sm:$0xff]  ;;  %s344_s3 = scalar_lea.vmem %s214_s21, 64 }
   0xf   :  { %334 = vmatprep.subr.bf16.mxu1 %v368_v3  ;;  %v338_v38 = vpack.c.bf16 %v123_v37, %v122_v36  ;;  %v222_v44 = vld [vmem:[%s499_s4] ss:$0 sm:$0xff]  ;;  %p345_p0 = scmp.ne.s32.totalorder %s214_s21, %s344_s3  ;;  %p350_p2 = scmp.lt.s32.totalorder %s344_s3, %s344_s3 }
  0x10   :  { %315 = vmatpush3.bf16.msra.mxu0 %v314_v21 }
  0x11   :  { %316 = vmatprep.subr.bf16.mxu0 %v368_v3  ;;  %p351_p3 = por %p350_p2, %p349_p1 }
  0x12   :  { %336 = vmatpush3.bf16.msra.mxu1 %v335_v24 }
  0x13   :  { %337 = vmatprep.subr.bf16.mxu1 %v368_v3  ;;  %p352_p4 = pnand %p351_p3, %p345_p0 }
  0x14   :  { %318 = vmatpush3.bf16.msra.mxu0 %v317_v25 }
  0x15   :  { %319 = vmatprep.subr.bf16.mxu0 %v368_v3 }
  0x16   :  { %339 = vmatpush3.bf16.msra.mxu1 %v338_v38 }
  0x18   :  { %321 = vmatpush3.bf16.msra.mxu0 %v320_v28 }
  0x19   :  { %322 = vmatprep.subr.bf16.mxu0 %v368_v3 }
  0x1c   :  { %324 = vmatpush3.bf16.msra.mxu0 %v323_v31 }
  0x1d   :  { %325 = vmatprep.subr.bf16.mxu0 %v368_v3 }
  0x20   :  { %327 = vmatpush3.bf16.msra.mxu0 %v326_v34 }
  0x23   :  { %283 = vmatmul.mubr.f32.vlgmr.msra.gmra.mrb[0].mxu0 %v21_v35 }
  0xf6   :  { %v111_v40 = vpop.f32.mrb[0].mxu0 }
  0xf7   :  { %v112_v41 = vadd.f32 %v221_v39, %v111_v40  ;;  %v284_v42 = vpop.f32.mrb[1].mxu0 }
  0xf9   :  { %v115_v43 = vmax.f32 %v112_v41, 0.0 }
  0xfb   :  { %302 = vmatmul.mubr.msk.f32.vlgmr.msra.gmra.mrb[0].mxu1 %vm131_vm1, %v115_v43 }
 0x1ce   :  { %v201_v45 = vpop.f32.mrb[0].mxu1 }
 0x1cf   :  { %v202_v46 = vadd.f32 %v222_v44, %v201_v45  ;;  %v303_v47 = vpop.f32.mrb[1].mxu1 }
 0x1d1   :  { %v205_v48 = vmax.f32 %v202_v46, 0.0 }
 0x1d3   :  { %206 = vst [vmem:[#allocation2] sm:$0xf] %v205_v48 }
 0x1d4   :  { %355 = shalt.err (!%p352_p4)
}
 0x1d5   :  { %s356_s23 = scalar_lea.hbm %s500_s5, 64 }
 0x1d6   :  { %p357_p5 = scmp.ne.s32.totalorder %s500_s5, %s356_s23  ;;  %p360_p6 = scmp.lt.u32.totalorder %s356_s23, %s500_s5 }
 0x1d8   :  { %p362_p7 = pnand %p360_p6, %p357_p5 }
 0x1da   :  { %365 = shalt.err (!%p362_p7)
}
 0x1db   :  { %216 = dma.vmem_to_hbm [thread:$0]  %s214_s21, 64, %s500_s5, [#allocation3]  }
 0x1dc   :  { %366 = dma.done.wait [#allocation3], 64  }
 0x1dd   :  { %367 = vsyncadd [#allocation3], 4294967232 }
 0x1de   :  { %220 = vsyncpa [#allocation3], 1 }

</bundles_post_ra>
